<compile_context>
chip_gen: v7x
topology: tpu7x:2x2x1
jax: 0.10.0
libtpu: 0.0.40
codegen_flags: <defaults>
</compile_context>

<pallas_src>
import functools

import jax
import jax.numpy as jnp
from jax import lax
from jax.experimental import pallas as pl
from jax.experimental.pallas import tpu as pltpu


def _round_up(a, b):
    return (a + b - 1) // b * b


def _tiling(n, tq):
    """Pad N only to a multiple of 128; pick a row-tile size that divides it."""
    n_pad = _round_up(n, 128)
    if n_pad <= tq:
        return n_pad, n_pad, 1
    t = max(128, (tq // 128) * 128)
    tq_eff = 128
    while t >= 128:
        if n_pad % t == 0:
            tq_eff = t
            break
        t -= 128
    return n_pad, tq_eff, n_pad // tq_eff


def prepare_adjacency(adj, n_pad):
    """Full N^2 pass (adj>0 -> int8, pad). Static per graph: cache the result
    and pass it to conditional_attention_forward instead of raw f32 adj."""
    n = adj.shape[0]
    adj_i8 = (adj > 0).astype(jnp.int8)
    if n_pad != n:
        adj_i8 = jnp.pad(adj_i8, ((0, n_pad - n), (0, n_pad - n)))
    return adj_i8


# ----------------------- Stage 1: fused projections ------------------------ #
# Per row tile of x:
#   wh_ref[m]   = x @ W_m                    (lane-aligned slab per head)
#   scal_ref    = x @ [W_m a_src_m | Wc_g | Wc_b] + bias   -> (TQ, 3M)
#   dst_ref     = (W_m a_dst_m) . x_j  lane-major           -> (M, TQ)
def proj_kernel(x_ref, w_ref, wscal_ref, bscal_ref, adst_ref,
                wh_ref, scal_ref, dst_ref, *, n_mechs, use_bf16):
    x = x_ref[...]                                     # (TQ, Fin) f32
    x_mm = x.astype(jnp.bfloat16) if use_bf16 else x
    # One small MXU pass per head; each head's Wh slab is written contiguously
    # so stage 2 never slices 16 lanes out of the middle of a 128-lane tile.
    for m in range(n_mechs):                           # static unroll
        w_m = w_ref[m]
        if use_bf16:
            w_m = w_m.astype(jnp.bfloat16)
        wh_ref[m] = jnp.dot(x_mm, w_m, preferred_element_type=jnp.float32)
    # Scalar columns (src logit, gamma, beta) stay f32: tiny matmul, precision
    # matters for FiLM scales / attention logits even when Wh uses bf16.
    scal_ref[...] = (
        jnp.dot(x, wscal_ref[...], preferred_element_type=jnp.float32)
        + bscal_ref[...])
    # Destination logits produced lane-major (M, TQ) directly on the MXU:
    # no (N,1)->(1,N) XLU relayout downstream.
    dst_ref[...] = lax.dot_general(
        adst_ref[...], x, dimension_numbers=(((1,), (1,)), ((), ())),
        preferred_element_type=jnp.float32)


# ------------------ Stage 2: row-tiled attention + FiLM --------------------- #
def attn_kernel(adj_ref, wh_ref, scal_ref, dst_ref, out_ref, *,
                n_mechs, f_out, leak, elem_bf16):
    tq = out_ref.shape[0]
    cdt = jnp.bfloat16 if elem_bf16 else jnp.float32   # elem_bf16: v6e/v7x only
    neg = -9e15

    # Edge-mask bias hoisted ONCE per row tile, shared by all heads.
    edge = adj_ref[...] > 0                            # (TQ, Npad)
    mask_bias = jnp.where(edge, jnp.zeros((), cdt), jnp.full((), neg, cdt))

    scal = scal_ref[...]                               # (TQ, 3M) f32 (tiled DMA)
    outs = []
    for m in range(n_mechs):                           # static unroll over heads
        src = scal[:, m:m + 1].astype(cdt)                       # (TQ, 1)
        gamma = scal[:, n_mechs + m:n_mechs + m + 1]             # (TQ, 1) f32
        beta = scal[:, 2 * n_mechs + m:2 * n_mechs + m + 1]      # (TQ, 1) f32
        dst = dst_ref[m:m + 1, :].astype(cdt)                    # (1, Npad)

        s = src + dst                                  # (TQ, Npad)
        # LeakyReLU + mask in 3 VPU ops per element (mul, max, add).
        e = jnp.maximum(s, leak * s) + mask_bias
        # Keep the max-shift: exp(-9e15 - max) -> 0 for masked / padded cols.
        e_max = jnp.max(e, axis=-1, keepdims=True)
        p = jnp.exp(e - e_max)                         # un-normalized probs
        denom = jnp.sum(p, axis=-1, keepdims=True, dtype=jnp.float32)

        # Normalization deferred past the matmul: 1/denom folded into FiLM
        # gamma, so the scaling only touches a (TQ, Fout) tile.
        wh = wh_ref[m]                                 # (Npad, Fout) slab
        h = jnp.dot(p, wh.astype(p.dtype), preferred_element_type=jnp.float32)
        inv = pl.reciprocal(denom, approx=True)        # EUP slot, not a divide
        outs.append((gamma * inv) * h + beta)

    # Single lane-dense store per row tile (output padded to a 128-lane
    # multiple): no per-head 16-lane masked vst.msk stores.
    pad = out_ref.shape[1] - n_mechs * f_out
    if pad:
        outs.append(jnp.zeros((tq, pad), jnp.float32))
    out_ref[...] = jnp.concatenate(outs, axis=-1).astype(out_ref.dtype)


# ------------------------------ JAX wrapper --------------------------------- #
def conditional_attention_forward(x, adj, params, *, leak=0.2, concat=True,
                                  activate=False, tq=256, use_bf16=False,
                                  elem_bf16=False):
    n, f_in = x.shape
    W = params["W"]            # (M, Fin, Fout)
    A = params["a"]            # (M, Fout, 2)  -> [a_src | a_dst]
    Wc = params["Wc"]          # (Fin, 2*M)    conditioner weight
    bc = params["bc"]          # (1, 2*M)      conditioner bias
    n_mechs, _, f_out = W.shape

    n_pad, tq_eff, n_tiles = _tiling(n, tq)

    # F.dropout(training=False) -> identity (both dropouts).

    # Adjacency preprocessing is a full N^2 XLA pass; callers should cache
    # prepare_adjacency() per graph.  Only done here if not already prepared.
    if not (adj.dtype == jnp.int8 and adj.shape[0] == n_pad):
        adj = prepare_adjacency(adj, n_pad)

    if n_pad != n:
        x = jnp.pad(x, ((0, n_pad - n), (0, 0)))

    # Fold per-mechanism attention vectors + conditioner into small matrices
    # (cheap, Fin x small).
    a_src = A[:, :, 0]                                     # (M, Fout)
    a_dst = A[:, :, 1]                                     # (M, Fout)
    src_cols = jnp.einsum("mio,mo->im", W, a_src)          # (Fin, M)
    d_mat = jnp.einsum("mio,mo->mi", W, a_dst)             # (M, Fin)
    w_scal = jnp.concatenate(
        [src_cols, Wc[:, :n_mechs], Wc[:, n_mechs:]], axis=1)     # (Fin, 3M)
    bc_flat = bc.reshape(-1).astype(jnp.float32)
    b_scal = jnp.concatenate(
        [jnp.zeros((n_mechs,), jnp.float32),
         bc_flat[:n_mechs], bc_flat[n_mechs:]]).reshape(1, 3 * n_mechs)

    c_scal = 3 * n_mechs
    c_out = n_mechs * f_out
    c_out_pad = _round_up(c_out, 128)    # lane-dense output stores

    # ---- stage 1: per-head Wh slabs + scalar columns + dst logits -----------
    wh_all, scal, dst = pl.pallas_call(
        functools.partial(proj_kernel, n_mechs=n_mechs, use_bf16=use_bf16),
        out_shape=(jax.ShapeDtypeStruct((n_mechs, n_pad, f_out), jnp.float32),
                   jax.ShapeDtypeStruct((n_pad, c_scal), jnp.float32),
                   jax.ShapeDtypeStruct((n_mechs, n_pad), jnp.float32)),
        grid=(n_tiles,),
        in_specs=[
            pl.BlockSpec((tq_eff, f_in), lambda i: (i, 0)),
            pl.BlockSpec((n_mechs, f_in, f_out), lambda i: (0, 0, 0)),
            pl.BlockSpec((f_in, c_scal), lambda i: (0, 0)),
            pl.BlockSpec((1, c_scal), lambda i: (0, 0)),
            pl.BlockSpec((n_mechs, f_in), lambda i: (0, 0)),
        ],
        out_specs=(pl.BlockSpec((n_mechs, tq_eff, f_out), lambda i: (0, i, 0)),
                   pl.BlockSpec((tq_eff, c_scal), lambda i: (i, 0)),
                   pl.BlockSpec((n_mechs, tq_eff), lambda i: (0, i))),
        compiler_params=pltpu.CompilerParams(
            dimension_semantics=("parallel",)),
    )(x, W, w_scal, b_scal, d_mat)

    # ---- stage 2: row-tiled attention, all heads per adj stream -------------
    # adj streamed once total as int8 (TQ, Npad) tiles (double-buffered DMA),
    # Wh/dst resident, scalar columns tiled.  Constant-index residents could be
    # pl.Buffered(1) to halve their footprint on v7x (64 MiB VMEM) if needed.
    out_pad = pl.pallas_call(
        functools.partial(attn_kernel, n_mechs=n_mechs, f_out=f_out,
                          leak=leak, elem_bf16=elem_bf16),
        out_shape=jax.ShapeDtypeStruct((n_pad, c_out_pad), jnp.float32),
        grid=(n_tiles,),
        in_specs=[
            pl.BlockSpec((tq_eff, n_pad), lambda i: (i, 0)),             # adj
            pl.BlockSpec((n_mechs, n_pad, f_out), lambda i: (0, 0, 0)),  # Wh
            pl.BlockSpec((tq_eff, c_scal), lambda i: (i, 0)),            # scal
            pl.BlockSpec((n_mechs, n_pad), lambda i: (0, 0)),            # dst
        ],
        out_specs=pl.BlockSpec((tq_eff, c_out_pad), lambda i: (i, 0)),
        compiler_params=pltpu.CompilerParams(
            dimension_semantics=("parallel",),
            vmem_limit_bytes=48 * 1024 * 1024),
    )(adj, wh_all, scal, dst)

    out = out_pad[:n, :c_out]                 # drop lane padding + padded rows
    if not concat:
        out = out.reshape(n, n_mechs, f_out).sum(axis=1)
    if activate:
        out = jax.nn.elu(out)
    return out


# ------------------------- pure-JAX reference (check) ------------------------ #
def reference_forward(x, adj, params, *, leak=0.2, concat=True, activate=False):
    W, A, Wc, bc = params["W"], params["a"], params["Wc"], params["bc"]
    n_mechs = W.shape[0]
    cond = x @ Wc + bc
    gamma = cond[:, :n_mechs].T
    beta = cond[:, n_mechs:].T
    outs = []
    for m in range(n_mechs):
        wh = x @ W[m]
        f = wh @ A[m]
        e = f[:, 0:1] + f[:, 1:2].T
        e = jnp.where(e > 0, e, leak * e)
        e = jnp.where(adj > 0, e, jnp.full_like(e, -9e15))
        att = jax.nn.softmax(e, axis=-1)
        h = att @ wh
        outs.append(gamma[m][:, None] * h + beta[m][:, None])
    out = jnp.concatenate(outs, axis=1) if concat else sum(outs)
    if activate:
        out = jax.nn.elu(out)
    return out


# ----------------------------------- main ------------------------------------ #
if __name__ == "__main__":
    N, F_IN, F_OUT, N_MECHS = 256, 32, 16, 2
    LEAK = 0.2   # dropout unused at inference
    TQ = 128     # -> 2 row tiles at N=256: exercises the tiled grid

    key = jax.random.PRNGKey(0)
    k_x, k_adj, k_w, k_a, k_wc, k_bc = jax.random.split(key, 6)

    x = jax.random.normal(k_x, (N, F_IN), dtype=jnp.float32)

    # random adjacency with self-loops (every row has >= 1 neighbor)
    adj = (jax.random.uniform(k_adj, (N, N)) < 0.1).astype(jnp.float32)
    adj = jnp.maximum(adj, jnp.eye(N, dtype=jnp.float32))

    params = {
        "W": 0.1 * jax.random.normal(k_w, (N_MECHS, F_IN, F_OUT), jnp.float32),
        "a": 0.1 * jax.random.normal(k_a, (N_MECHS, F_OUT, 2), jnp.float32),
        "Wc": 0.1 * jax.random.normal(k_wc, (F_IN, 2 * N_MECHS), jnp.float32),
        "bc": 0.1 * jax.random.normal(k_bc, (1, 2 * N_MECHS), jnp.float32),
    }

    # Adjacency is static per graph: preprocess (int8 mask + pad) ONCE outside
    # the per-call hot path and pass the prepared array in.
    n_pad, _, _ = _tiling(N, TQ)
    adj_prep = jax.block_until_ready(prepare_adjacency(adj, n_pad))

    out = conditional_attention_forward(
        x, adj_prep, params, leak=LEAK, concat=True, activate=False, tq=TQ,
        use_bf16=False,    # bf16 MXU Wh projection (v6e/v7x full-rate MXU)
        elem_bf16=False)   # bf16 elementwise/exp chain (v6e/v7x only; not v5e)
    out = jax.block_until_ready(out)

    assert out.shape == (N, N_MECHS * F_OUT)
    assert bool(jnp.all(jnp.isfinite(out)))

    ref = reference_forward(x, adj, params, leak=LEAK, concat=True,
                            activate=False)
    assert bool(jnp.allclose(out, ref, rtol=2e-2, atol=2e-2)), (
        float(jnp.max(jnp.abs(out - ref))))

    print("KERNEL_OK")
</pallas_src>

<mosaic_0001>
module attributes {stable_mosaic.version = 11 : i64} {
  func.func @proj_kernel(%arg0: i32, %arg1: memref<128x32xf32, #tpu.memory_space<vmem>>, %arg2: memref<2x32x16xf32, #tpu.memory_space<vmem>>, %arg3: memref<32x6xf32, #tpu.memory_space<vmem>>, %arg4: memref<1x6xf32, #tpu.memory_space<vmem>>, %arg5: memref<2x32xf32, #tpu.memory_space<vmem>>, %arg6: memref<2x128x16xf32, #tpu.memory_space<vmem>>, %arg7: memref<128x6xf32, #tpu.memory_space<vmem>>, %arg8: memref<2x128xf32, #tpu.memory_space<vmem>>) attributes {dimension_semantics = [#tpu.dimension_semantics<parallel>], iteration_bounds = array<i64: 2>, scalar_prefetch = 0 : i64, scratch_operands = 0 : i64, tpu.core_type = #tpu.core_type<tc>, window_params = [{transform_indices = @transform_0, window_bounds = array<i64: 128, 32>}, {pipeline_mode = #tpu.pipeline_mode<synchronous>, transform_indices = @transform_1, window_bounds = array<i64: 2, 32, 16>}, {pipeline_mode = #tpu.pipeline_mode<synchronous>, transform_indices = @transform_2, window_bounds = array<i64: 32, 6>}, {pipeline_mode = #tpu.pipeline_mode<synchronous>, transform_indices = @transform_3, window_bounds = array<i64: 1, 6>}, {pipeline_mode = #tpu.pipeline_mode<synchronous>, transform_indices = @transform_4, window_bounds = array<i64: 2, 32>}, {transform_indices = @transform_5, window_bounds = array<i64: 2, 128, 16>}, {transform_indices = @transform_6, window_bounds = array<i64: 128, 6>}, {transform_indices = @transform_7, window_bounds = array<i64: 2, 128>}]} {
    %c0 = arith.constant 0 : index
    %c0_0 = arith.constant 0 : index
    %0 = vector.load %arg1[%c0, %c0_0] : memref<128x32xf32, #tpu.memory_space<vmem>>, vector<128x32xf32>
    %c0_1 = arith.constant 0 : index
    %c0_2 = arith.constant 0 : index
    %c0_3 = arith.constant 0 : index
    %1 = vector.load %arg2[%c0_1, %c0_2, %c0_3] : memref<2x32x16xf32, #tpu.memory_space<vmem>>, vector<1x32x16xf32>
    %2 = vector.shape_cast %1 : vector<1x32x16xf32> to vector<32x16xf32>
    %cst = arith.constant dense<0.000000e+00> : vector<128x16xf32>
    %3 = tpu.matmul %0, %2, %cst {dimension_numbers = #tpu.dot_dimension_numbers<[1], [0], [0], [1], [0, 0, 1, 1], [], []>} : vector<128x32xf32>, vector<32x16xf32>, vector<128x16xf32> -> vector<128x16xf32>
    %c0_4 = arith.constant 0 : index
    %c0_5 = arith.constant 0 : index
    %c0_6 = arith.constant 0 : index
    %4 = vector.load %arg6[%c0_4, %c0_5, %c0_6] : memref<2x128x16xf32, #tpu.memory_space<vmem>>, vector<1x128x16xf32>
    %5 = vector.shape_cast %4 : vector<1x128x16xf32> to vector<128x16xf32>
    %6 = vector.shape_cast %3 : vector<128x16xf32> to vector<1x128x16xf32>
    tpu.vector_store %arg6[%c0_4, %c0_5, %c0_6], %6 {strides = array<i32>} : memref<2x128x16xf32, #tpu.memory_space<vmem>>, vector<1x128x16xf32>,
    %c1 = arith.constant 1 : index
    %c0_7 = arith.constant 0 : index
    %c0_8 = arith.constant 0 : index
    %7 = vector.load %arg2[%c1, %c0_7, %c0_8] : memref<2x32x16xf32, #tpu.memory_space<vmem>>, vector<1x32x16xf32>
    %8 = vector.shape_cast %7 : vector<1x32x16xf32> to vector<32x16xf32>
    %cst_9 = arith.constant dense<0.000000e+00> : vector<128x16xf32>
    %9 = tpu.matmul %0, %8, %cst_9 {dimension_numbers = #tpu.dot_dimension_numbers<[1], [0], [0], [1], [0, 0, 1, 1], [], []>} : vector<128x32xf32>, vector<32x16xf32>, vector<128x16xf32> -> vector<128x16xf32>
    %c1_10 = arith.constant 1 : index
    %c0_11 = arith.constant 0 : index
    %c0_12 = arith.constant 0 : index
    %10 = vector.load %arg6[%c1_10, %c0_11, %c0_12] : memref<2x128x16xf32, #tpu.memory_space<vmem>>, vector<1x128x16xf32>
    %11 = vector.shape_cast %10 : vector<1x128x16xf32> to vector<128x16xf32>
    %12 = vector.shape_cast %9 : vector<128x16xf32> to vector<1x128x16xf32>
    tpu.vector_store %arg6[%c1_10, %c0_11, %c0_12], %12 {strides = array<i32>} : memref<2x128x16xf32, #tpu.memory_space<vmem>>, vector<1x128x16xf32>,
    %c0_13 = arith.constant 0 : index
    %c0_14 = arith.constant 0 : index
    %13 = vector.load %arg3[%c0_13, %c0_14] : memref<32x6xf32, #tpu.memory_space<vmem>>, vector<32x6xf32>
    %cst_15 = arith.constant dense<0.000000e+00> : vector<128x6xf32>
    %14 = tpu.matmul %0, %13, %cst_15 {dimension_numbers = #tpu.dot_dimension_numbers<[1], [0], [0], [1], [0, 0, 1, 1], [], []>} : vector<128x32xf32>, vector<32x6xf32>, vector<128x6xf32> -> vector<128x6xf32>
    %c0_16 = arith.constant 0 : index
    %c0_17 = arith.constant 0 : index
    %15 = vector.load %arg4[%c0_16, %c0_17] : memref<1x6xf32, #tpu.memory_space<vmem>>, vector<1x6xf32>
    %16 = vector.broadcast %15 : vector<1x6xf32> to vector<128x6xf32>
    %17 = arith.addf %14, %16 : vector<128x6xf32>
    %c0_18 = arith.constant 0 : index
    %c0_19 = arith.constant 0 : index
    %18 = vector.load %arg7[%c0_18, %c0_19] : memref<128x6xf32, #tpu.memory_space<vmem>>, vector<128x6xf32>
    tpu.vector_store %arg7[%c0_18, %c0_19], %17 {strides = array<i32>} : memref<128x6xf32, #tpu.memory_space<vmem>>, vector<128x6xf32>,
    %c0_20 = arith.constant 0 : index
    %c0_21 = arith.constant 0 : index
    %19 = vector.load %arg5[%c0_20, %c0_21] : memref<2x32xf32, #tpu.memory_space<vmem>>, vector<2x32xf32>
    %cst_22 = arith.constant dense<0.000000e+00> : vector<2x128xf32>
    %20 = tpu.matmul %19, %0, %cst_22 {dimension_numbers = #tpu.dot_dimension_numbers<[1], [1], [0], [0], [0, 0, 1, 0], [], []>} : vector<2x32xf32>, vector<128x32xf32>, vector<2x128xf32> -> vector<2x128xf32>
    %c0_23 = arith.constant 0 : index
    %c0_24 = arith.constant 0 : index
    %21 = vector.load %arg8[%c0_23, %c0_24] : memref<2x128xf32, #tpu.memory_space<vmem>>, vector<2x128xf32>
    tpu.vector_store %arg8[%c0_23, %c0_24], %20 {strides = array<i32>} : memref<2x128xf32, #tpu.memory_space<vmem>>, vector<2x128xf32>,
    return
  }
  func.func @transform_0(%arg0: i32) -> (i32, i32) {
    %c0_i32 = arith.constant 0 : i32
    %c0_i32_0 = arith.constant 0 : i32
    return %arg0, %c0_i32 : i32, i32
  }
  func.func @transform_1(%arg0: i32) -> (i32, i32, i32) {
    %c0_i32 = arith.constant 0 : i32
    %c0_i32_0 = arith.constant 0 : i32
    %c0_i32_1 = arith.constant 0 : i32
    %c0_i32_2 = arith.constant 0 : i32
    return %c0_i32, %c0_i32_0, %c0_i32_1 : i32, i32, i32
  }
  func.func @transform_2(%arg0: i32) -> (i32, i32) {
    %c0_i32 = arith.constant 0 : i32
    %c0_i32_0 = arith.constant 0 : i32
    %c0_i32_1 = arith.constant 0 : i32
    return %c0_i32, %c0_i32_0 : i32, i32
  }
  func.func @transform_3(%arg0: i32) -> (i32, i32) {
    %c0_i32 = arith.constant 0 : i32
    %c0_i32_0 = arith.constant 0 : i32
    %c0_i32_1 = arith.constant 0 : i32
    return %c0_i32, %c0_i32_0 : i32, i32
  }
  func.func @transform_4(%arg0: i32) -> (i32, i32) {
    %c0_i32 = arith.constant 0 : i32
    %c0_i32_0 = arith.constant 0 : i32
    %c0_i32_1 = arith.constant 0 : i32
    return %c0_i32, %c0_i32_0 : i32, i32
  }
  func.func @transform_5(%arg0: i32) -> (i32, i32, i32) {
    %c0_i32 = arith.constant 0 : i32
    %c0_i32_0 = arith.constant 0 : i32
    %c0_i32_1 = arith.constant 0 : i32
    return %c0_i32, %arg0, %c0_i32_0 : i32, i32, i32
  }
  func.func @transform_6(%arg0: i32) -> (i32, i32) {
    %c0_i32 = arith.constant 0 : i32
    %c0_i32_0 = arith.constant 0 : i32
    return %arg0, %c0_i32 : i32, i32
  }
  func.func @transform_7(%arg0: i32) -> (i32, i32) {
    %c0_i32 = arith.constant 0 : i32
    %c0_i32_0 = arith.constant 0 : i32
    return %c0_i32, %arg0 : i32, i32
  }
}

</mosaic_0001>

<bundles_post_ra>
// kernel: tpu_custom_call.1
= control target key start
LH: loop header
LB: loop body
LE: loop exit
PB: predicated region body
PF: predicated region fallthrough
CT: control target
= control target key end

     0   :  { %13 = vsyncpa [#allocation4], 0  ;;  %s2201_s0 = inlined_call_operand.vmem [shape: f32[256,32], index: 0, kind: input, shape index: {}]   ;;  %s2202_s1 = inlined_call_operand.vmem [shape: f32[2,32,16], index: 1, kind: input, shape index: {}]   ;;  %s2203_s2 = inlined_call_operand.vmem [shape: f32[32,6], index: 2, kind: input, shape index: {}]   ;;  %s2204_s3 = inlined_call_operand.vmem [shape: f32[1,6], index: 3, kind: input, shape index: {}]   ;;  %s2205_s4 = inlined_call_operand.vmem [shape: f32[2,32], index: 4, kind: input, shape index: {}]   ;;  %s2206_s5 = inlined_call_operand.vmem [shape: f32[2,256,16], index: 5, kind: output, shape index: {0}]   ;;  %s2207_s6 = inlined_call_operand.vmem [shape: f32[256,6], index: 6, kind: output, shape index: {1}]   ;;  %s2208_s7 = inlined_call_operand.hbm [shape: f32[2,256], index: 7, kind: output, shape index: {2}]  }
   0x1   :  { %15 = vsyncpa [#allocation4 + $0x1], 0  ;;  %s1765_s24 = smov 0   ;;  %s1767_s25 = smov 0  }
   0x2   :  { %s1769_s26 = smov 0   ;;  %s1771_s27 = smov 0  }
   0x3 LB: > { %s1786_s28 = sadd.s32 4294967295, %s1719_s27   ;;  %s1247_s29 = sadd.s32 4294967294, %s1719_s27   ;;  %s1719_s27 = sphi %s1771_s27, %s2216_s27   ;;  %s1715_s26 = sphi %s1769_s26, %s2215_s26   ;;  %s1711_s25 = sphi %s1767_s25, %s2214_s25   ;;  %s1707_s24 = sphi %s1765_s24, %s2213_s24  }
   0x4   : > { %s1790_s30 = sadd.s32 1, %s1719_s27   ;;  %s138_s8 = sadd.s32 1, %s1715_s26 }
   0x5   : > { %s135_s9 = ssub.s32 %s1719_s27, %s1790_s30  ;;  %p148_p0 = scmp.ne.s32.totalorder %s1715_s26, %s1711_s25 }
   0x6   : > { %p136_p1 = scmp.eq.s32.totalorder %s135_s9, 0  ;;  %p149_p2 = scmp.eq.s32.totalorder %s1786_s28, 1 }
   0x7   : > { %p206_p3 = scmp.ne.s32.totalorder %s1711_s25, %s1707_s24  ;;  %p207_p4 = scmp.eq.s32.totalorder %s1247_s29, 1 }
   0x8   : > { %s1801_s10 = scalar_select %p136_p1, %s1715_s26, %s138_s8  }
   0x9   : > { %p1803_p5 = por %p149_p2, %p148_p0  ;;  %p1807_p6 = por %p207_p4, %p206_p3 }
   0xa   : > { %p1250_p7 = scmp.ge.s32.totalorder %s1719_s27, 1  ;;  %p246_p8 = scmp.lt.s32.totalorder %s1719_s27, 3 }
   0xc   : > { %p247_p9 = pnand %p1250_p7, %p246_p8 }
   0xd   : > { %v1273_v0 = vld [vmem:[%s2202_s1 + $0x20] sm:$0xff] (!%p247_p9)  ;;  %v1274_v1 = vld [vmem:[%s2202_s1 + $0x28] sm:$0xff] (!%p247_p9)  ;;  %v1275_v2 = vld [vmem:[%s2202_s1 + $0x30] sm:$0xff] (!%p247_p9)  ;;  %s1253_s19 = sshll.u32 (!%p247_p9), %s1786_s28, 4  ;;  %vm320_vm0 = vcmask (!%p247_p9), 261120   ;;  %v1721_v19 = vmov (!%p247_p9), 0.0|0.0  }
   0xe   : > { %250 = sbr.rel (%p247_p9) target bundleno = 331 (0x14b), region = 40  ;;  %v1567_v3 = vpack.c.bf16 (!%p247_p9), %v1274_v1, %v1273_v0  ;;  %v1276_v4 = vld [vmem:[%s2202_s1 + $0x38] sm:$0xff] (!%p247_p9)  ;;  %v316_v5 = vld [vmem:[%s2202_s1] sm:$0xff] (!%p247_p9)  ;;  %v317_v6 = vld [vmem:[%s2202_s1 + $0x8] sm:$0xff] (!%p247_p9)  ;;  %p288_p10 = scmp.lt.s32.totalorder (!%p247_p9), %s1253_s19, 31  ;;  %vm1722_vm2 = vmmov (!%p247_p9), 0  }
   0xf   : > { %v1571_v7 = vpack.c.bf16 (!%p247_p9), %v1276_v4, %v1275_v2  ;;  %v1559_v8 = vpack.c.bf16 (!%p247_p9), %v317_v6, %v316_v5  ;;  %v318_v9 = vld [vmem:[%s2202_s1 + $0x10] sm:$0xff] (!%p247_p9)  ;;  %v319_v10 = vld [vmem:[%s2202_s1 + $0x18] sm:$0xff] (!%p247_p9)  ;;  %v698_v12 = vld [vmem:[%s2203_s2] sm:$0xff] (!%p247_p9)  ;;  %v1723_v40 = vmov (!%p247_p9), 0.0   ;;  %s1977_s17 = sand.u32 (!%p247_p9), 1, %s1711_s25   ;;  %vm514_vm3 = vcmask (!%p247_p9), 130048  }
  0x10   : > { %1568 = vmatprep.subr.bf16.mxu1 (!%p247_p9), %v1567_v3  ;;  %v1563_v11 = vpack.c.bf16 (!%p247_p9), %v319_v10, %v318_v9  ;;  %v699_v13 = vld [vmem:[%s2203_s2 + $0x8] sm:$0xff] (!%p247_p9)  ;;  %v700_v16 = vld [vmem:[%s2203_s2 + $0x10] sm:$0xff] (!%p247_p9)  ;;  %v701_v17 = vld [vmem:[%s2203_s2 + $0x18] sm:$0xff] (!%p247_p9)  ;;  %s1251_s18 = sshll.u32 (!%p247_p9), %s1977_s17, 8  ;;  %vm854_vm4 = vcmask (!%p247_p9), 48128   ;;  %s956_s13 = scalar_lea.sflag (!%p247_p9), [#allocation4], %s1977_s17 }
  0x11   : > { %1570 = vmatpush3.bf16.msra.mxu1 (!%p247_p9), %v1567_v3  ;;  %1560 = vmatprep.subr.bf16.mxu0 (!%p247_p9), %v1559_v8  ;;  %v1575_v14 = vpack.c.bf16 (!%p247_p9), %v699_v13, %v698_v12  ;;  %v1579_v21 = vpack.c.bf16 (!%p247_p9), %v701_v17, %v700_v16  ;;  %vm1887_vm1 = vmpackc.low (!%p247_p9), %vm320_vm0, %vm320_vm0  ;;  %v871_v45 = vld [vmem:[%s2205_s4] sm:$0x3] (!%p247_p9)  ;;  %s1980_s20 = scalar_lea.vmem (!%p247_p9), [#allocation2], %s1251_s18 }
  0x12   : > { %1572 = vmatprep.subr.bf16.mxu1 (!%p247_p9), %v1571_v7  ;;  %1562 = vmatpush3.bf16.msra.mxu0 (!%p247_p9), %v1559_v8 }
  0x13   : > { %1564 = vmatprep.subr.bf16.mxu0 (!%p247_p9), %v1563_v11 }
  0x15   : > { %s2218_s19 = smov (!%p288_p10, %s1253_s19), 31  ;;  %1574 = vmatpush3.bf16.msra.mxu1 %v1571_v7  ;;  %s1350_s14 = sshll.u32 (%p1803_p5), %s1786_s28, 7 }
  0x16   : > { %s1254_s21 = sshll.u32 %s2218_s19, 3  ;;  %1566 = vmatpush3.bf16.msra.mxu0 %v1563_v11  ;;  %1583 = vmatprep.subr.bf16.mxu1 %v1721_v19  ;;  %s1252_s19 = sshll.u32 %s1977_s17, 1 }
  0x17   : > { %s1852_s29 = scalar_lea.vmem %s2201_s0, %s1254_s21  ;;  %1576 = vmatprep.subr.bf16.mxu0 %v1575_v14  ;;  %s2054_s9 = scalar_lea.vmem %s2207_s6, %s1254_s21 }
  0x18   : > { %v1855_v15 = vld [vmem:[%s1852_s29] sm:$0xff]  ;;  %v1866_v18 = vld [vmem:[%s1852_s29 + $0x8] sm:$0xff]  ;;  %v1872_v20 = vld [vmem:[%s1852_s29 + $0x10] sm:$0xff]  ;;  %s2089_s21 = scalar_lea.vmem [#allocation3], %s1252_s19  ;;  %s2102_s18 = scalar_lea.vmem (%p1803_p5), %s2206_s5, %s1350_s14 }
  0x19   : > { %1436 = vmatprep.mubr.msk.f32.mxu0 %vm320_vm0, %v1855_v15  ;;  %1468 = vmatprep.mubr.msk.f32.mxu1 %vm320_vm0, %v1855_v15  ;;  %v1584_v22 = vpack.c.bf16 %v1866_v18, %v1855_v15  ;;  %v303_v23 = vld [vmem:[%s1852_s29 + $0x18] sm:$0xff]  ;;  %v304_v25 = vld [vmem:[%s1852_s29 + $0x20] sm:$0xff]  ;;  %v305_v26 = vld [vmem:[%s1852_s29 + $0x28] sm:$0xff] }
  0x1a   : > { %1469 = vmatmul.mubr.msk.f32.vlgmr.msra.gmra.mrb[0].mxu1 %vm320_vm0, %v1866_v18  ;;  %1437 = vmatmul.mubr.msk.f32.vlgmr.msra.gmra.mrb[0].mxu0 %vm320_vm0, %v1866_v18  ;;  %v306_v27 = vld [vmem:[%s1852_s29 + $0x30] sm:$0xff]  ;;  %v1588_v28 = vpack.c.bf16 %v303_v23, %v1872_v20  ;;  %v307_v29 = vld [vmem:[%s1852_s29 + $0x38] sm:$0xff]  ;;  %v308_v30 = vld [vmem:[%s1852_s29 + $0x40] sm:$0xff]  ;;  %v1592_v33 = vpack.c.bf16 %v305_v26, %v304_v25 }
  0x1b   : > { %1471 = vmatprep.mubr.msk.f32.mxu1 %vm320_vm0, %v1872_v20  ;;  %1578 = vmatpush3.bf16.msra.mxu0 %v1575_v14  ;;  %v309_v31 = vld [vmem:[%s1852_s29 + $0x48] sm:$0xff]  ;;  %v310_v32 = vld [vmem:[%s1852_s29 + $0x50] sm:$0xff]  ;;  %v311_v34 = vld [vmem:[%s1852_s29 + $0x58] sm:$0xff]  ;;  %v1596_v38 = vpack.c.bf16 %v307_v29, %v306_v27 }
  0x1c   : > { %1439 = vmatprep.mubr.msk.f32.mxu0 %vm320_vm0, %v1872_v20  ;;  %1580 = vmatprep.subr.bf16.mxu0 %v1579_v21  ;;  %v312_v35 = vld [vmem:[%s1852_s29 + $0x60] sm:$0xff]  ;;  %v313_v36 = vld [vmem:[%s1852_s29 + $0x68] sm:$0xff]  ;;  %v314_v37 = vld [vmem:[%s1852_s29 + $0x70] sm:$0xff]  ;;  %v1600_v41 = vpack.c.bf16 %v309_v31, %v308_v30  ;;  %v1604_v42 = vpack.c.bf16 %v311_v34, %v310_v32 }
  0x1d   : > { %v315_v39 = vld [vmem:[%s1852_s29 + $0x78] sm:$0xff]  ;;  %v1608_v43 = vpack.c.bf16 %v313_v36, %v312_v35  ;;  %v1309_v14 = vld [vmem:[%s2204_s3] ss:$0 sm:$0xff] }
  0x1e   : > { %1472 = vmatmul.mubr.msk.f32.gmra.mrb[2].mxu1 %vm320_vm0, %v303_v23  ;;  %1440 = vmatmul.mubr.msk.f32.gmra.mrb[2].mxu0 %vm320_vm0, %v303_v23  ;;  %v1612_v44 = vpack.c.bf16 %v315_v39, %v314_v37 }
  0x1f   : > { %1474 = vmatprep.mubr.msk.f32.mxu1 %vm320_vm0, %v304_v25  ;;  %1586 = vmatpush3.bf16.xpose.msk.msra.mxu1 %vm1887_vm1, %v1584_v22 }
  0x20   : > { %1442 = vmatprep.mubr.msk.f32.mxu0 %vm320_vm0, %v304_v25  ;;  %1587 = vmatprep.subr.bf16.mxu1 %v1721_v19 }
  0x21   : > { %1582 = vmatpush3.bf16.msra.mxu0 %v1579_v21 }
  0x22   : > { %1475 = vmatmul.mubr.msk.f32.gmra.mrb[4].mxu1 %vm320_vm0, %v305_v26  ;;  %1443 = vmatmul.mubr.msk.f32.gmra.mrb[4].mxu0 %vm320_vm0, %v305_v26 }
  0x23   : > { %1477 = vmatprep.mubr.msk.f32.mxu1 %vm320_vm0, %v306_v27  ;;  %1445 = vmatprep.mubr.msk.f32.mxu0 %vm320_vm0, %v306_v27 }
  0x26   : > { %1478 = vmatmul.mubr.msk.f32.gmra.mrb[6].mxu1 %vm320_vm0, %v307_v29  ;;  %1446 = vmatmul.mubr.msk.f32.gmra.mrb[6].mxu0 %vm320_vm0, %v307_v29 }
  0x27   : > { %1480 = vmatprep.mubr.msk.f32.mxu1 %vm320_vm0, %v308_v30  ;;  %1590 = vmatpush3.bf16.xpose.msk.msra.mxu1 %vm1887_vm1, %v1588_v28 }
  0x28   : > { %1448 = vmatprep.mubr.msk.f32.mxu0 %vm320_vm0, %v308_v30  ;;  %1591 = vmatprep.subr.bf16.mxu1 %v1721_v19 }
  0x2a   : > { %1481 = vmatmul.mubr.msk.f32.gmra.mrb[8].mxu1 %vm320_vm0, %v309_v31  ;;  %1449 = vmatmul.mubr.msk.f32.gmra.mrb[8].mxu0 %vm320_vm0, %v309_v31 }
  0x2b   : > { %1483 = vmatprep.mubr.msk.f32.mxu1 %vm320_vm0, %v310_v32  ;;  %1451 = vmatprep.mubr.msk.f32.mxu0 %vm320_vm0, %v310_v32 }
  0x2e   : > { %1484 = vmatmul.mubr.msk.f32.gmra.mrb[10].mxu1 %vm320_vm0, %v311_v34  ;;  %1452 = vmatmul.mubr.msk.f32.gmra.mrb[10].mxu0 %vm320_vm0, %v311_v34 }
  0x2f   : > { %1486 = vmatprep.mubr.msk.f32.mxu1 %vm320_vm0, %v312_v35  ;;  %1594 = vmatpush3.bf16.xpose.msk.msra.mxu1 %vm1887_vm1, %v1592_v33 }
  0x30   : > { %1454 = vmatprep.mubr.msk.f32.mxu0 %vm320_vm0, %v312_v35  ;;  %1595 = vmatprep.subr.bf16.mxu1 %v1721_v19 }
  0x32   : > { %1487 = vmatmul.mubr.msk.f32.gmra.mrb[12].mxu1 %vm320_vm0, %v313_v36  ;;  %1455 = vmatmul.mubr.msk.f32.gmra.mrb[12].mxu0 %vm320_vm0, %v313_v36 }
  0x33   : > { %1489 = vmatprep.mubr.msk.f32.mxu1 %vm320_vm0, %v314_v37  ;;  %1457 = vmatprep.mubr.msk.f32.mxu0 %vm320_vm0, %v314_v37 }
  0x36   : > { %1490 = vmatmul.mubr.msk.f32.gmra.mrb[14].mxu1 %vm320_vm0, %v315_v39  ;;  %1458 = vmatmul.mubr.msk.f32.gmra.mrb[14].mxu0 %vm320_vm0, %v315_v39 }
  0x37   : > { %1556 = vmatprep.mubr.msk.f32.mxu1 %vm1722_vm2, %v1723_v40  ;;  %1598 = vmatpush3.bf16.xpose.msk.msra.mxu1 %vm1887_vm1, %v1596_v38 }
  0x38   : > { %1500 = vmatprep.mubr.msk.f32.mxu0 %vm320_vm0, %v1855_v15  ;;  %1599 = vmatprep.subr.bf16.mxu1 %v1721_v19 }
  0x3a   : > { %1501 = vmatmul.mubr.msk.f32.vlgmr.msra.gmra.mrb[16].mxu0 %vm320_vm0, %v1866_v18 }
  0x3b   : > { %1503 = vmatprep.mubr.msk.f32.mxu0 %vm320_vm0, %v1872_v20 }
  0x3e   : > { %1504 = vmatmul.mubr.msk.f32.gmra.mrb[18].mxu0 %vm320_vm0, %v303_v23 }
  0x3f   : > { %1602 = vmatpush3.bf16.xpose.msk.msra.mxu1 %vm1887_vm1, %v1600_v41  ;;  %1506 = vmatprep.mubr.msk.f32.mxu0 %vm320_vm0, %v304_v25 }
  0x40   : > { %1603 = vmatprep.subr.bf16.mxu1 %v1721_v19 }
  0x42   : > { %1507 = vmatmul.mubr.msk.f32.gmra.mrb[20].mxu0 %vm320_vm0, %v305_v26 }
  0x43   : > { %1509 = vmatprep.mubr.msk.f32.mxu0 %vm320_vm0, %v306_v27 }
  0x46   : > { %1510 = vmatmul.mubr.msk.f32.gmra.mrb[22].mxu0 %vm320_vm0, %v307_v29 }
  0x47   : > { %1606 = vmatpush3.bf16.xpose.msk.msra.mxu1 %vm1887_vm1, %v1604_v42  ;;  %1512 = vmatprep.mubr.msk.f32.mxu0 %vm320_vm0, %v308_v30 }
  0x48   : > { %1607 = vmatprep.subr.bf16.mxu1 %v1721_v19 }
  0x4a   : > { %1513 = vmatmul.mubr.msk.f32.gmra.mrb[24].mxu0 %vm320_vm0, %v309_v31 }
  0x4b   : > { %1515 = vmatprep.mubr.msk.f32.mxu0 %vm320_vm0, %v310_v32 }
  0x4e   : > { %1516 = vmatmul.mubr.msk.f32.gmra.mrb[26].mxu0 %vm320_vm0, %v311_v34 }
  0x4f   : > { %1610 = vmatpush3.bf16.xpose.msk.msra.mxu1 %vm1887_vm1, %v1608_v43  ;;  %1518 = vmatprep.mubr.msk.f32.mxu0 %vm320_vm0, %v312_v35 }
  0x50   : > { %1611 = vmatprep.subr.bf16.mxu1 %v1721_v19 }
  0x52   : > { %1519 = vmatmul.mubr.msk.f32.gmra.mrb[28].mxu0 %vm320_vm0, %v313_v36 }
  0x53   : > { %1521 = vmatprep.mubr.msk.f32.mxu0 %vm320_vm0, %v314_v37 }
  0x56   : > { %1522 = vmatmul.mubr.msk.f32.gmra.mrb[30].mxu0 %vm320_vm0, %v315_v39 }
  0x57   : > { %1614 = vmatpush3.bf16.xpose.msk.msra.mxu1 %vm1887_vm1, %v1612_v44 }
  0x5e   : > { %1557 = vmatmul.mubr.msk.f32.vlgmr.msra.gmra.mrb[16].mxu1 %vm320_vm0, %v871_v45 }
  0xed   : > { %v1470_v46 = vpop.f32.mrb[0].mxu1  ;;  %v1438_v47 = vpop.f32.mrb[0].mxu0 }
  0xee   : > { %1294 = vst.msk [vmem:[%s1980_s20 + $0x88] sm:$0xff] %vm514_vm3, %v1470_v46  ;;  %v602_v48 = vpop.f32.mrb[1].mxu1  ;;  %516 = vst.msk [vmem:[%s1980_s20 + $0x8] sm:$0xff] %vm514_vm3, %v1438_v47  ;;  %v435_v49 = vpop.f32.mrb[1].mxu0 }
  0xef   : > { %1293 = vst.msk [vmem:[%s1980_s20 + $0x80] sm:$0xff] %vm514_vm3, %v602_v48  ;;  %515 = vst.msk [vmem:[%s1980_s20] sm:$0xff] %vm514_vm3, %v435_v49 }
  0xf1   : > { %v1473_v50 = vpop.f32.mrb[2].mxu1  ;;  %v1441_v51 = vpop.f32.mrb[2].mxu0 }
  0xf2   : > { %1296 = vst.msk [vmem:[%s1980_s20 + $0x98] sm:$0xff] %vm514_vm3, %v1473_v50  ;;  %v612_v52 = vpop.f32.mrb[3].mxu1  ;;  %518 = vst.msk [vmem:[%s1980_s20 + $0x18] sm:$0xff] %vm514_vm3, %v1441_v51  ;;  %v445_v53 = vpop.f32.mrb[3].mxu0 }
  0xf3   : > { %1295 = vst.msk [vmem:[%s1980_s20 + $0x90] sm:$0xff] %vm514_vm3, %v612_v52  ;;  %517 = vst.msk [vmem:[%s1980_s20 + $0x10] sm:$0xff] %vm514_vm3, %v445_v53 }
  0xf5   : > { %v1476_v54 = vpop.f32.mrb[4].mxu1  ;;  %v1444_v55 = vpop.f32.mrb[4].mxu0  ;;  %v1057_v50 = vld [vmem:[%s1980_s20 + $0x8] sm:$0xff] (%p1803_p5) }
  0xf6   : > { %1298 = vst.msk [vmem:[%s1980_s20 + $0xa8] sm:$0xff] %vm514_vm3, %v1476_v54  ;;  %v622_v56 = vpop.f32.mrb[5].mxu1  ;;  %520 = vst.msk [vmem:[%s1980_s20 + $0x28] sm:$0xff] %vm514_vm3, %v1444_v55  ;;  %v455_v57 = vpop.f32.mrb[5].mxu0  ;;  %v1055_v49 = vld [vmem:[%s1980_s20] sm:$0xff] (%p1803_p5) }
  0xf7   : > { %1297 = vst.msk [vmem:[%s1980_s20 + $0xa0] sm:$0xff] %vm514_vm3, %v622_v56  ;;  %519 = vst.msk [vmem:[%s1980_s20 + $0x20] sm:$0xff] %vm514_vm3, %v455_v57 }
  0xf8   : > { %1056 = vst [vmem:[%s2102_s18] sm:$0xff] (%p1803_p5), %v1055_v49  ;;  %1058 = vst [vmem:[%s2102_s18 + $0x8] sm:$0xff] (%p1803_p5), %v1057_v50 }
  0xf9   : > { %v1479_v58 = vpop.f32.mrb[6].mxu1  ;;  %v1447_v59 = vpop.f32.mrb[6].mxu0  ;;  %v1061_v52 = vld [vmem:[%s1980_s20 + $0x18] sm:$0xff] (%p1803_p5) }
  0xfa   : > { %1300 = vst.msk [vmem:[%s1980_s20 + $0xb8] sm:$0xff] %vm514_vm3, %v1479_v58  ;;  %v632_v60 = vpop.f32.mrb[7].mxu1  ;;  %522 = vst.msk [vmem:[%s1980_s20 + $0x38] sm:$0xff] %vm514_vm3, %v1447_v59  ;;  %v465_v61 = vpop.f32.mrb[7].mxu0  ;;  %v1059_v51 = vld [vmem:[%s1980_s20 + $0x10] sm:$0xff] (%p1803_p5) }
  0xfb   : > { %1299 = vst.msk [vmem:[%s1980_s20 + $0xb0] sm:$0xff] %vm514_vm3, %v632_v60  ;;  %521 = vst.msk [vmem:[%s1980_s20 + $0x30] sm:$0xff] %vm514_vm3, %v465_v61 }
  0xfc   : > { %1060 = vst [vmem:[%s2102_s18 + $0x10] sm:$0xff] (%p1803_p5), %v1059_v51  ;;  %1062 = vst [vmem:[%s2102_s18 + $0x18] sm:$0xff] (%p1803_p5), %v1061_v52 }
  0xfd   : > { %v1482_v62 = vpop.f32.mrb[8].mxu1  ;;  %v1450_v63 = vpop.f32.mrb[8].mxu0  ;;  %v1065_v54 = vld [vmem:[%s1980_s20 + $0x28] sm:$0xff] (%p1803_p5) }
  0xfe   : > { %1302 = vst.msk [vmem:[%s1980_s20 + $0xc8] sm:$0xff] %vm514_vm3, %v1482_v62  ;;  %v642_v0 = vpop.f32.mrb[9].mxu1  ;;  %524 = vst.msk [vmem:[%s1980_s20 + $0x48] sm:$0xff] %vm514_vm3, %v1450_v63  ;;  %v475_v1 = vpop.f32.mrb[9].mxu0  ;;  %v1063_v53 = vld [vmem:[%s1980_s20 + $0x20] sm:$0xff] (%p1803_p5) }
  0xff   : > { %1301 = vst.msk [vmem:[%s1980_s20 + $0xc0] sm:$0xff] %vm514_vm3, %v642_v0  ;;  %523 = vst.msk [vmem:[%s1980_s20 + $0x40] sm:$0xff] %vm514_vm3, %v475_v1  ;;  %v1087_v1 = vld [vmem:[%s1980_s20 + $0x80] sm:$0xff] (%p1803_p5) }
 0x100   : > { %1064 = vst [vmem:[%s2102_s18 + $0x20] sm:$0xff] (%p1803_p5), %v1063_v53  ;;  %1066 = vst [vmem:[%s2102_s18 + $0x28] sm:$0xff] (%p1803_p5), %v1065_v54 }
 0x101   : > { %v1485_v2 = vpop.f32.mrb[10].mxu1  ;;  %v1453_v3 = vpop.f32.mrb[10].mxu0  ;;  %v1069_v56 = vld [vmem:[%s1980_s20 + $0x38] sm:$0xff] (%p1803_p5)  ;;  %1088 = vst [vmem:[%s2102_s18 + $0x100] sm:$0xff] (%p1803_p5), %v1087_v1 }
 0x102   : > { %1304 = vst.msk [vmem:[%s1980_s20 + $0xd8] sm:$0xff] %vm514_vm3, %v1485_v2  ;;  %v652_v4 = vpop.f32.mrb[11].mxu1  ;;  %526 = vst.msk [vmem:[%s1980_s20 + $0x58] sm:$0xff] %vm514_vm3, %v1453_v3  ;;  %v485_v5 = vpop.f32.mrb[11].mxu0  ;;  %v1067_v55 = vld [vmem:[%s1980_s20 + $0x30] sm:$0xff] (%p1803_p5)  ;;  %v1089_v2 = vld [vmem:[%s1980_s20 + $0x88] sm:$0xff] (%p1803_p5) }
 0x103   : > { %1303 = vst.msk [vmem:[%s1980_s20 + $0xd0] sm:$0xff] %vm514_vm3, %v652_v4  ;;  %525 = vst.msk [vmem:[%s1980_s20 + $0x50] sm:$0xff] %vm514_vm3, %v485_v5  ;;  %v1091_v3 = vld [vmem:[%s1980_s20 + $0x90] sm:$0xff] (%p1803_p5)  ;;  %v1093_v4 = vld [vmem:[%s1980_s20 + $0x98] sm:$0xff] (%p1803_p5) }
 0x104   : > { %1068 = vst [vmem:[%s2102_s18 + $0x30] sm:$0xff] (%p1803_p5), %v1067_v55  ;;  %1070 = vst [vmem:[%s2102_s18 + $0x38] sm:$0xff] (%p1803_p5), %v1069_v56  ;;  %v1095_v5 = vld [vmem:[%s1980_s20 + $0xa0] sm:$0xff] (%p1803_p5) }
 0x105   : > { %v1488_v6 = vpop.f32.mrb[12].mxu1  ;;  %v1456_v7 = vpop.f32.mrb[12].mxu0  ;;  %v1073_v58 = vld [vmem:[%s1980_s20 + $0x48] sm:$0xff] (%p1803_p5)  ;;  %1090 = vst [vmem:[%s2102_s18 + $0x108] sm:$0xff] (%p1803_p5), %v1089_v2  ;;  %1092 = vst [vmem:[%s2102_s18 + $0x110] sm:$0xff] (%p1803_p5), %v1091_v3 }
 0x106   : > { %1306 = vst.msk [vmem:[%s1980_s20 + $0xe8] sm:$0xff] %vm514_vm3, %v1488_v6  ;;  %v662_v8 = vpop.f32.mrb[13].mxu1  ;;  %528 = vst.msk [vmem:[%s1980_s20 + $0x68] sm:$0xff] %vm514_vm3, %v1456_v7  ;;  %v495_v9 = vpop.f32.mrb[13].mxu0  ;;  %v1071_v57 = vld [vmem:[%s1980_s20 + $0x40] sm:$0xff] (%p1803_p5)  ;;  %v1097_v6 = vld [vmem:[%s1980_s20 + $0xa8] sm:$0xff] (%p1803_p5) }
 0x107   : > { %1305 = vst.msk [vmem:[%s1980_s20 + $0xe0] sm:$0xff] %vm514_vm3, %v662_v8  ;;  %527 = vst.msk [vmem:[%s1980_s20 + $0x60] sm:$0xff] %vm514_vm3, %v495_v9  ;;  %v1099_v7 = vld [vmem:[%s1980_s20 + $0xb0] sm:$0xff] (%p1803_p5)  ;;  %v1101_v8 = vld [vmem:[%s1980_s20 + $0xb8] sm:$0xff] (%p1803_p5) }
 0x108   : > { %1072 = vst [vmem:[%s2102_s18 + $0x40] sm:$0xff] (%p1803_p5), %v1071_v57  ;;  %1074 = vst [vmem:[%s2102_s18 + $0x48] sm:$0xff] (%p1803_p5), %v1073_v58  ;;  %v1103_v9 = vld [vmem:[%s1980_s20 + $0xc0] sm:$0xff] (%p1803_p5) }
 0x109   : > { %v1491_v10 = vpop.f32.mrb[14].mxu1  ;;  %v1459_v11 = vpop.f32.mrb[14].mxu0  ;;  %v1077_v60 = vld [vmem:[%s1980_s20 + $0x58] sm:$0xff] (%p1803_p5)  ;;  %1094 = vst [vmem:[%s2102_s18 + $0x118] sm:$0xff] (%p1803_p5), %v1093_v4  ;;  %1096 = vst [vmem:[%s2102_s18 + $0x120] sm:$0xff] (%p1803_p5), %v1095_v5 }
 0x10a   : > { %1308 = vst.msk [vmem:[%s1980_s20 + $0xf8] sm:$0xff] %vm514_vm3, %v1491_v10  ;;  %v672_v12 = vpop.f32.mrb[15].mxu1  ;;  %530 = vst.msk [vmem:[%s1980_s20 + $0x78] sm:$0xff] %vm514_vm3, %v1459_v11  ;;  %v505_v13 = vpop.f32.mrb[15].mxu0  ;;  %v1075_v59 = vld [vmem:[%s1980_s20 + $0x50] sm:$0xff] (%p1803_p5)  ;;  %v1105_v10 = vld [vmem:[%s1980_s20 + $0xc8] sm:$0xff] (%p1803_p5) }
 0x10b   : > { %1307 = vst.msk [vmem:[%s1980_s20 + $0xf0] sm:$0xff] %vm514_vm3, %v672_v12  ;;  %529 = vst.msk [vmem:[%s1980_s20 + $0x70] sm:$0xff] %vm514_vm3, %v505_v13  ;;  %v1107_v11 = vld [vmem:[%s1980_s20 + $0xd0] sm:$0xff] (%p1803_p5)  ;;  %v1109_v12 = vld [vmem:[%s1980_s20 + $0xd8] sm:$0xff] (%p1803_p5) }
 0x10c   : > { %1076 = vst [vmem:[%s2102_s18 + $0x50] sm:$0xff] (%p1803_p5), %v1075_v59  ;;  %1078 = vst [vmem:[%s2102_s18 + $0x58] sm:$0xff] (%p1803_p5), %v1077_v60 }
 0x10d   : > { %v1502_v15 = vpop.f32.mrb[16].mxu0  ;;  %v1081_v62 = vld [vmem:[%s1980_s20 + $0x68] sm:$0xff] (%p1803_p5)  ;;  %1098 = vst [vmem:[%s2102_s18 + $0x128] sm:$0xff] (%p1803_p5), %v1097_v6  ;;  %1100 = vst [vmem:[%s2102_s18 + $0x130] sm:$0xff] (%p1803_p5), %v1099_v7 }
 0x10e   : > { %v781_v16 = vadd.f32 %v1502_v15, %v1309_v14  ;;  %v775_v17 = vpop.f32.mrb[17].mxu0  ;;  %v1079_v61 = vld [vmem:[%s1980_s20 + $0x60] sm:$0xff] (%p1803_p5)  ;;  %1082 = vst [vmem:[%s2102_s18 + $0x68] sm:$0xff] (%p1803_p5), %v1081_v62  ;;  %1102 = vst [vmem:[%s2102_s18 + $0x138] sm:$0xff] (%p1803_p5), %v1101_v8 }
 0x10f   : > { %v776_v18 = vadd.f32 %v1309_v14, %v775_v17  ;;  %1080 = vst [vmem:[%s2102_s18 + $0x60] sm:$0xff] (%p1803_p5), %v1079_v61  ;;  %1104 = vst [vmem:[%s2102_s18 + $0x140] sm:$0xff] (%p1803_p5), %v1103_v9  ;;  %v1111_v13 = vld [vmem:[%s1980_s20 + $0xe0] sm:$0xff] (%p1803_p5) }
 0x110   : > { %856 = vst.msk [vmem:[%s2054_s9 + $0x8] sm:$0xff] %vm854_vm4, %v781_v16  ;;  %1106 = vst [vmem:[%s2102_s18 + $0x148] sm:$0xff] (%p1803_p5), %v1105_v10 }
 0x111   : > { %855 = vst.msk [vmem:[%s2054_s9] sm:$0xff] %vm854_vm4, %v776_v18  ;;  %v1505_v19 = vpop.f32.mrb[18].mxu0  ;;  %v1085_v0 = vld [vmem:[%s1980_s20 + $0x78] sm:$0xff] (%p1803_p5)  ;;  %1108 = vst [vmem:[%s2102_s18 + $0x150] sm:$0xff] (%p1803_p5), %v1107_v11 }
 0x112   : > { %v791_v20 = vadd.f32 %v1505_v19, %v1309_v14  ;;  %v785_v21 = vpop.f32.mrb[19].mxu0  ;;  %v1083_v63 = vld [vmem:[%s1980_s20 + $0x70] sm:$0xff] (%p1803_p5)  ;;  %1086 = vst [vmem:[%s2102_s18 + $0x78] sm:$0xff] (%p1803_p5), %v1085_v0  ;;  %1110 = vst [vmem:[%s2102_s18 + $0x158] sm:$0xff] (%p1803_p5), %v1109_v12  ;;  %v1117_v16 = vld [vmem:[%s1980_s20 + $0xf8] sm:$0xff] (%p1803_p5) }
 0x113   : > { %v786_v22 = vadd.f32 %v1309_v14, %v785_v21  ;;  %1084 = vst [vmem:[%s2102_s18 + $0x70] sm:$0xff] (%p1803_p5), %v1083_v63  ;;  %1112 = vst [vmem:[%s2102_s18 + $0x160] sm:$0xff] (%p1803_p5), %v1111_v13  ;;  %v1115_v15 = vld [vmem:[%s1980_s20 + $0xf0] sm:$0xff] (%p1803_p5) }
 0x114   : > { %858 = vst.msk [vmem:[%s2054_s9 + $0x18] sm:$0xff] %vm854_vm4, %v791_v20  ;;  %1116 = vst [vmem:[%s2102_s18 + $0x170] sm:$0xff] (%p1803_p5), %v1115_v15 }
 0x115   : > { %857 = vst.msk [vmem:[%s2054_s9 + $0x10] sm:$0xff] %vm854_vm4, %v786_v22  ;;  %v1508_v23 = vpop.f32.mrb[20].mxu0  ;;  %1118 = vst [vmem:[%s2102_s18 + $0x178] sm:$0xff] (%p1803_p5), %v1117_v16 }
 0x116   : > { %v801_v24 = vadd.f32 %v1508_v23, %v1309_v14  ;;  %v795_v25 = vpop.f32.mrb[21].mxu0 }
 0x117   : > { %v796_v26 = vadd.f32 %v1309_v14, %v795_v25 }
 0x118   : > { %860 = vst.msk [vmem:[%s2054_s9 + $0x28] sm:$0xff] %vm854_vm4, %v801_v24 }
 0x119   : > { %859 = vst.msk [vmem:[%s2054_s9 + $0x20] sm:$0xff] %vm854_vm4, %v796_v26  ;;  %v1511_v27 = vpop.f32.mrb[22].mxu0 }
 0x11a   : > { %v811_v28 = vadd.f32 %v1511_v27, %v1309_v14  ;;  %v805_v29 = vpop.f32.mrb[23].mxu0 }
 0x11b   : > { %v806_v30 = vadd.f32 %v1309_v14, %v805_v29 }
 0x11c   : > { %862 = vst.msk [vmem:[%s2054_s9 + $0x38] sm:$0xff] %vm854_vm4, %v811_v28 }
 0x11d   : > { %861 = vst.msk [vmem:[%s2054_s9 + $0x30] sm:$0xff] %vm854_vm4, %v806_v30  ;;  %v1514_v31 = vpop.f32.mrb[24].mxu0 }
 0x11e   : > { %v821_v32 = vadd.f32 %v1514_v31, %v1309_v14  ;;  %v815_v33 = vpop.f32.mrb[25].mxu0 }
 0x11f   : > { %v816_v34 = vadd.f32 %v1309_v14, %v815_v33 }
 0x120   : > { %864 = vst.msk [vmem:[%s2054_s9 + $0x48] sm:$0xff] %vm854_vm4, %v821_v32 }
 0x121   : > { %863 = vst.msk [vmem:[%s2054_s9 + $0x40] sm:$0xff] %vm854_vm4, %v816_v34  ;;  %v1517_v35 = vpop.f32.mrb[26].mxu0 }
 0x122   : > { %v831_v36 = vadd.f32 %v1517_v35, %v1309_v14  ;;  %v825_v37 = vpop.f32.mrb[27].mxu0 }
 0x123   : > { %v826_v38 = vadd.f32 %v1309_v14, %v825_v37 }
 0x124   : > { %866 = vst.msk [vmem:[%s2054_s9 + $0x58] sm:$0xff] %vm854_vm4, %v831_v36 }
 0x125   : > { %865 = vst.msk [vmem:[%s2054_s9 + $0x50] sm:$0xff] %vm854_vm4, %v826_v38  ;;  %v1520_v39 = vpop.f32.mrb[28].mxu0 }
 0x126   : > { %v841_v40 = vadd.f32 %v1520_v39, %v1309_v14  ;;  %v835_v41 = vpop.f32.mrb[29].mxu0 }
 0x127   : > { %v836_v42 = vadd.f32 %v1309_v14, %v835_v41 }
 0x128   : > { %868 = vst.msk [vmem:[%s2054_s9 + $0x68] sm:$0xff] %vm854_vm4, %v841_v40 }
 0x129   : > { %867 = vst.msk [vmem:[%s2054_s9 + $0x60] sm:$0xff] %vm854_vm4, %v836_v42  ;;  %v1523_v43 = vpop.f32.mrb[30].mxu0 }
 0x12a   : > { %v851_v44 = vadd.f32 %v1523_v43, %v1309_v14  ;;  %v845_v45 = vpop.f32.mrb[31].mxu0 }
 0x12b   : > { %v846_v46 = vadd.f32 %v1309_v14, %v845_v45  ;;  %v1113_v14 = vld [vmem:[%s1980_s20 + $0xe8] sm:$0xff] (%p1803_p5) }
 0x12c   : > { %870 = vst.msk [vmem:[%s2054_s9 + $0x78] sm:$0xff] %vm854_vm4, %v851_v44  ;;  %962 = sbr.rel (!%p1803_p5) target bundleno = 307 (0x133), region = 44  ;;  %1114 = vst [vmem:[%s2102_s18 + $0x168] sm:$0xff] (%p1803_p5), %v1113_v14 }
 0x12d   : > { %869 = vst.msk [vmem:[%s2054_s9 + $0x70] sm:$0xff] %vm854_vm4, %v846_v46 }
 0x131   : > { %v941_v47 = vpop.f32.mrb[16].mxu1 }
 0x132   : > { %945 = vst [vmem:[%s2089_s21] sm:$0x3] %v941_v47  ;;  %v1558_v48 = vpop.f32.mrb[17].mxu1 }
 0x133 PF: > { %s1347_s22 = sshll.u32 %s1786_s28, 5  ;;  %s1135_s23 = sshll.u32 %s2089_s21, 4  ;;  %s1136_s23 = int_to_ptr.vmem [resolvable:$true] %s1135_s23 }
 0x134   : > { %s1133_s9 = scalar_lea.hbm %s2208_s7, %s1347_s22  ;;  %s1657_s19 = scalar_lea.vmem %s1136_s23, 32 }
 0x135   : > { %p1658_p11 = scmp.ne.s32.totalorder %s1136_s23, %s1657_s19  ;;  %s1724_s14 = smov [#allocation3]  }
 0x136   : > { %s1661_s20 = sshll.u32 %s1724_s14, 4  ;;  %s1662_s20 = int_to_ptr.vmem [resolvable:$false] %s1661_s20 }
 0x137   : > { %p1659_p12 = pnand %p1658_p11, %p1803_p5  ;;  %s1663_s15 = scalar_lea.vmem %s1662_s20, 64 }
 0x138   : > { %p1664_p0 = scmp.lt.s32.totalorder %s1136_s23, %s1662_s20  ;;  %p1665_p1 = scmp.lt.s32.totalorder %s1663_s15, %s1657_s19 }
 0x139   : > { %p1660_p13 = pneg %p1659_p12 }
 0x13a   : > { %p1666_p2 = por %p1665_p1, %p1664_p0 }
 0x13c   : > { %p1667_p3 = pnand %p1666_p2, %p1660_p13 }
 0x13e   : > { %1670 = shalt.err (!%p1667_p3)
}
 0x13f   : > { %s1671_s28 = scalar_lea.hbm %s1133_s9, 32  ;;  %s1675_s18 = scalar_lea.hbm %s2208_s7, 64 }
 0x140   : > { %p1672_p4 = scmp.ne.s32.totalorder %s1133_s9, %s1671_s28  ;;  %p1676_p9 = scmp.lt.u32.totalorder %s1133_s9, %s2208_s7 }
 0x141   : > { %p1677_p10 = scmp.lt.u32.totalorder %s1675_s18, %s1671_s28  ;;  %p1679_p12 = scmp.lt.u32.totalorder %s1671_s28, %s1133_s9 }
 0x142   : > { %p1673_p7 = pnand %p1672_p4, %p1803_p5 }
 0x143   : > { %p1678_p11 = por %p1677_p10, %p1676_p9 }
 0x144   : > { %p1674_p8 = pneg %p1673_p7 }
 0x145   : > { %p1680_p0 = por %p1679_p12, %p1678_p11 }
 0x147   : > { %p1681_p13 = pnand %p1680_p0, %p1674_p8 }
 0x149   : > { %1684 = shalt.err (!%p1681_p13)
}
 0x14a   : > { %1615 = dma.vmem_to_hbm [thread:$0]  (%p1803_p5), %s1136_s23, 32, %s1133_s9, %s956_s13  }
 0x14b PF: > { %p1621_p1 = scmp.ge.s32.totalorder %s1719_s27, 2  ;;  %s1162_s8 = sand.u32 1, %s1707_s24  }
 0x14c   : > { %s1163_s19 = scalar_lea.sflag [#allocation4], %s1162_s8 }
 0x14d   : > { %p1618_p2 = pnand %p1621_p1, %p1807_p6 }
 0x14f   : > { %1702 = dma.done.wait (!%p1618_p2), %s1163_s19, 32  }
 0x150   : > { %1704 = vsyncadd (!%p1618_p2), %s1163_s19, 4294967264  ;;  %p18_p3 = scmp.ge.s32.totalorder %s1790_s30, 4   ;;  %s2213_s24 = smov %s1711_s25 }
 0x151   : > { %s2214_s25 = smov %s1715_s26  ;;  %s2215_s26 = smov %s1801_s10 }
 0x152   : > { %s2216_s27 = smov %s1790_s30  ;;  %20 = sbr.rel (!%p18_p3) target bundleno = 3 (0x3), region = 139 }
 0x159   :  { %1168 = vsyncpa [#allocation4], 1 }
 0x15a   :  { %1170 = vsyncpa [#allocation4 + $0x1], 1 }

</bundles_post_ra>
